<compile_context>
chip_gen: v5e
topology: v5e:2x2
jax: 0.10.0
libtpu: 0.0.40
codegen_flags: <defaults>
</compile_context>

<pallas_src>
import jax
import jax.numpy as jnp
from jax.experimental import pallas as pl
from jax.experimental.pallas import tpu as pltpu


def _make_lstm_predict_kernel(n_steps, batch, n_inputs, n_neurons, n_outputs):
    H = n_neurons
    B = batch

    def kernel(xf_ref, wih_ref, whh_ref, b_ref, wfc_ref, bfc_ref,
               out_ref, seq_ref, hn_ref, cn_ref):
        # ---- Hoisted, non-recurrent input projection for ALL time steps ----
        # xf_ref: (n_steps*B, n_inputs) ; wih_ref: (n_inputs, 4H) ; b_ref: (1, 4H)
        gates_x = (jnp.dot(xf_ref[...], wih_ref[...],
                           preferred_element_type=jnp.float32)
                   + b_ref[...])                         # (n_steps*B, 4H)

        w_hh = whh_ref[...]                              # (H, 4H), resident in vregs/VMEM

        h = jnp.zeros((B, H), jnp.float32)
        c = jnp.zeros((B, H), jnp.float32)

        # ---- Serial recurrence, fully unrolled (n_steps is small & static) ----
        # Only h @ W_hh^T sits on the h_{t-1} -> h_t dependency chain.
        for t in range(n_steps):
            gx_t = gates_x[t * B:(t + 1) * B, :]         # static sublane slice (B, 4H)
            gates = gx_t + jnp.dot(h, w_hh,
                                   preferred_element_type=jnp.float32)

            sig = jax.nn.sigmoid(gates)                  # one EUP pass over full 128 lanes
            tnh = jnp.tanh(gates)                        # one EUP pass over full 128 lanes
            i_g = sig[:, 0 * H:1 * H]
            f_g = sig[:, 1 * H:2 * H]
            g_g = tnh[:, 2 * H:3 * H]
            o_g = sig[:, 3 * H:4 * H]

            c = f_g * c + i_g * g_g
            h = o_g * jnp.tanh(c)

            seq_ref[t] = h                               # lstm_out[t] = h_t (VMEM store)

        # ---- Finalize: hidden state + FC head + sigmoid ----
        hn_ref[...] = h[None]
        cn_ref[...] = c[None]
        logits = (jnp.dot(h, wfc_ref[...], preferred_element_type=jnp.float32)
                  + bfc_ref[...])
        out_ref[...] = jax.nn.sigmoid(logits)

    return kernel


def lstm_predict_forward(x, params, *, n_steps, n_inputs, n_neurons, n_outputs):
    """x: (batch, n_steps, n_inputs) float32 — matches the PyTorch call signature."""
    batch = x.shape[0]
    H = n_neurons

    # torch.reshape(input, (n_steps, batch, n_inputs)) is a raw row-major
    # reinterpret; flattening the first two dims keeps the identical element
    # order, so (batch, n_steps, n_inputs) -> (n_steps*batch, n_inputs) is the
    # same bytes the LSTM would see time-major.
    x_flat = jnp.reshape(x, (n_steps * batch, n_inputs))

    w_ih_t = params["w_ih_t"]          # (n_inputs, 4H)
    w_hh_t = params["w_hh_t"]          # (H, 4H)
    b_gate = params["b_gate"]          # (1, 4H)  == b_ih + b_hh
    w_fc_t = params["w_fc_t"]          # (H, n_outputs)
    b_fc = params["b_fc"]              # (1, n_outputs)

    out_shapes = (
        jax.ShapeDtypeStruct((batch, n_outputs), jnp.float32),   # out
        jax.ShapeDtypeStruct((n_steps, batch, H), jnp.float32),  # lstm_out
        jax.ShapeDtypeStruct((1, batch, H), jnp.float32),        # h_n
        jax.ShapeDtypeStruct((1, batch, H), jnp.float32),        # c_n
    )

    # Single grid point: everything (inputs, weights, outputs) fits VMEM at
    # these sizes, so each array is one full block resident for the whole call.
    vmem_spec = pl.BlockSpec(memory_space=pltpu.MemorySpace.VMEM)
    # TODO(synk): for production H (>=512) on v7x (64 MiB VMEM), tile the 4H
    # dimension of W_hh/W_ih (or cast weights to bf16) instead of full-block VMEM.

    kernel = _make_lstm_predict_kernel(n_steps, batch, n_inputs, H, n_outputs)

    out, lstm_out, h_n, c_n = pl.pallas_call(
        kernel,
        out_shape=out_shapes,
        in_specs=[vmem_spec] * 6,
        out_specs=(vmem_spec, vmem_spec, vmem_spec, vmem_spec),
    )(x_flat, w_ih_t, w_hh_t, b_gate, w_fc_t, b_fc)

    # PyTorch returns (out, lstm_out, hidden) with hidden == (h_n, c_n)
    return out, lstm_out, (h_n, c_n)


def init_params(key, n_inputs, n_neurons, n_outputs):
    """Deterministic synthetic parameters with the same shapes as nn.LSTM / nn.Linear."""
    H = n_neurons
    ks = jax.random.split(key, 6)
    scale = 1.0 / jnp.sqrt(jnp.float32(H))
    w_ih = jax.random.uniform(ks[0], (4 * H, n_inputs), jnp.float32, -scale, scale)
    w_hh = jax.random.uniform(ks[1], (4 * H, H), jnp.float32, -scale, scale)
    b_ih = jax.random.uniform(ks[2], (4 * H,), jnp.float32, -scale, scale)
    b_hh = jax.random.uniform(ks[3], (4 * H,), jnp.float32, -scale, scale)
    w_fc = jax.random.uniform(ks[4], (n_outputs, H), jnp.float32, -scale, scale)
    b_fc = jax.random.uniform(ks[5], (n_outputs,), jnp.float32, -scale, scale)
    return {
        "w_ih_t": w_ih.T,                        # (n_inputs, 4H)
        "w_hh_t": w_hh.T,                        # (H, 4H)
        "b_gate": (b_ih + b_hh)[None, :],        # (1, 4H)
        "w_fc_t": w_fc.T,                        # (H, n_outputs)
        "b_fc": b_fc[None, :],                   # (1, n_outputs)
    }


def _reference_forward(x, params, *, n_steps, n_inputs, n_neurons, n_outputs):
    """Pure-JAX reference (mirrors the PyTorch forward) for a sanity check."""
    batch = x.shape[0]
    H = n_neurons
    X = jnp.reshape(x, (n_steps, batch, n_inputs))

    def step(carry, x_t):
        h, c = carry
        gates = x_t @ params["w_ih_t"] + h @ params["w_hh_t"] + params["b_gate"]
        i = jax.nn.sigmoid(gates[:, 0 * H:1 * H])
        f = jax.nn.sigmoid(gates[:, 1 * H:2 * H])
        g = jnp.tanh(gates[:, 2 * H:3 * H])
        o = jax.nn.sigmoid(gates[:, 3 * H:4 * H])
        c = f * c + i * g
        h = o * jnp.tanh(c)
        return (h, c), h

    h0 = jnp.zeros((batch, H), jnp.float32)
    c0 = jnp.zeros((batch, H), jnp.float32)
    (h_n, c_n), seq = jax.lax.scan(step, (h0, c0), X)
    out = jax.nn.sigmoid(seq[-1] @ params["w_fc_t"] + params["b_fc"])
    return out, seq, (h_n[None], c_n[None])


if __name__ == "__main__":
    batch, n_steps, n_inputs, n_neurons, n_outputs = 2, 8, 8, 32, 4

    key = jax.random.PRNGKey(0)
    k_x, k_p = jax.random.split(key)
    x = jax.random.normal(k_x, (batch, n_steps, n_inputs), jnp.float32)
    params = init_params(k_p, n_inputs, n_neurons, n_outputs)

    out, lstm_out, (h_n, c_n) = lstm_predict_forward(
        x, params, n_steps=n_steps, n_inputs=n_inputs,
        n_neurons=n_neurons, n_outputs=n_outputs)
    jax.block_until_ready((out, lstm_out, h_n, c_n))

    # sanity check against a pure-JAX reference
    r_out, r_seq, (r_h, r_c) = _reference_forward(
        x, params, n_steps=n_steps, n_inputs=n_inputs,
        n_neurons=n_neurons, n_outputs=n_outputs)
    assert jnp.allclose(out, r_out, atol=1e-4, rtol=1e-4)
    assert jnp.allclose(lstm_out, r_seq, atol=1e-4, rtol=1e-4)
    assert jnp.allclose(h_n, r_h, atol=1e-4, rtol=1e-4)
    assert jnp.allclose(c_n, r_c, atol=1e-4, rtol=1e-4)

    print("KERNEL_OK")
</pallas_src>

<mosaic_0001>
module attributes {stable_mosaic.version = 11 : i64} {
  func.func @kernel(%arg0: memref<16x8xf32, #tpu.memory_space<vmem>>, %arg1: memref<8x128xf32, #tpu.memory_space<vmem>>, %arg2: memref<32x128xf32, #tpu.memory_space<vmem>>, %arg3: memref<1x128xf32, #tpu.memory_space<vmem>>, %arg4: memref<32x4xf32, #tpu.memory_space<vmem>>, %arg5: memref<1x4xf32, #tpu.memory_space<vmem>>, %arg6: memref<2x4xf32, #tpu.memory_space<vmem>>, %arg7: memref<8x2x32xf32, #tpu.memory_space<vmem>>, %arg8: memref<1x2x32xf32, #tpu.memory_space<vmem>>, %arg9: memref<1x2x32xf32, #tpu.memory_space<vmem>>) attributes {dimension_semantics = [], scalar_prefetch = 0 : i64, scratch_operands = 0 : i64, tpu.core_type = #tpu.core_type<tc>} {
    %c0 = arith.constant 0 : index
    %c0_0 = arith.constant 0 : index
    %0 = vector.load %arg0[%c0, %c0_0] : memref<16x8xf32, #tpu.memory_space<vmem>>, vector<16x8xf32>
    %c0_1 = arith.constant 0 : index
    %c0_2 = arith.constant 0 : index
    %1 = vector.load %arg1[%c0_1, %c0_2] : memref<8x128xf32, #tpu.memory_space<vmem>>, vector<8x128xf32>
    %cst = arith.constant dense<0.000000e+00> : vector<16x128xf32>
    %2 = tpu.matmul %0, %1, %cst {dimension_numbers = #tpu.dot_dimension_numbers<[1], [0], [0], [1], [0, 0, 1, 1], [], []>} : vector<16x8xf32>, vector<8x128xf32>, vector<16x128xf32> -> vector<16x128xf32>
    %c0_3 = arith.constant 0 : index
    %c0_4 = arith.constant 0 : index
    %3 = vector.load %arg3[%c0_3, %c0_4] : memref<1x128xf32, #tpu.memory_space<vmem>>, vector<1x128xf32>
    %4 = vector.broadcast %3 : vector<1x128xf32> to vector<16x128xf32>
    %5 = arith.addf %2, %4 : vector<16x128xf32>
    %c0_5 = arith.constant 0 : index
    %c0_6 = arith.constant 0 : index
    %6 = vector.load %arg2[%c0_5, %c0_6] : memref<32x128xf32, #tpu.memory_space<vmem>>, vector<32x128xf32>
    %cst_7 = arith.constant 0.000000e+00 : f32
    %7 = vector.broadcast %cst_7 : f32 to vector<2x32xf32>
    %cst_8 = arith.constant 0.000000e+00 : f32
    %8 = vector.broadcast %cst_8 : f32 to vector<2x32xf32>
    %9 = vector.extract_strided_slice %5 {offsets = [0, 0], sizes = [2, 128], strides = [1, 1]} : vector<16x128xf32> to vector<2x128xf32>
    %cst_9 = arith.constant dense<0.000000e+00> : vector<2x128xf32>
    %10 = tpu.matmul %7, %6, %cst_9 {dimension_numbers = #tpu.dot_dimension_numbers<[1], [0], [0], [1], [0, 0, 1, 1], [], []>} : vector<2x32xf32>, vector<32x128xf32>, vector<2x128xf32> -> vector<2x128xf32>
    %11 = arith.addf %9, %10 : vector<2x128xf32>
    %12 = arith.negf %11 : vector<2x128xf32>
    %13 = math.exp %12 : vector<2x128xf32>
    %cst_10 = arith.constant 1.000000e+00 : f32
    %14 = vector.broadcast %cst_10 : f32 to vector<2x128xf32>
    %15 = arith.addf %14, %13 : vector<2x128xf32>
    %16 = arith.divf %14, %15 : vector<2x128xf32>
    %17 = math.tanh %11 : vector<2x128xf32>
    %18 = vector.extract_strided_slice %16 {offsets = [0, 0], sizes = [2, 32], strides = [1, 1]} : vector<2x128xf32> to vector<2x32xf32>
    %19 = vector.extract_strided_slice %16 {offsets = [0, 32], sizes = [2, 32], strides = [1, 1]} : vector<2x128xf32> to vector<2x32xf32>
    %20 = vector.extract_strided_slice %17 {offsets = [0, 64], sizes = [2, 32], strides = [1, 1]} : vector<2x128xf32> to vector<2x32xf32>
    %21 = vector.extract_strided_slice %16 {offsets = [0, 96], sizes = [2, 32], strides = [1, 1]} : vector<2x128xf32> to vector<2x32xf32>
    %22 = arith.mulf %19, %8 : vector<2x32xf32>
    %23 = arith.mulf %18, %20 : vector<2x32xf32>
    %24 = arith.addf %22, %23 : vector<2x32xf32>
    %25 = math.tanh %24 : vector<2x32xf32>
    %26 = arith.mulf %21, %25 : vector<2x32xf32>
    %c0_11 = arith.constant 0 : index
    %c0_12 = arith.constant 0 : index
    %c0_13 = arith.constant 0 : index
    %27 = vector.load %arg7[%c0_11, %c0_12, %c0_13] : memref<8x2x32xf32, #tpu.memory_space<vmem>>, vector<1x2x32xf32>
    %28 = vector.shape_cast %27 : vector<1x2x32xf32> to vector<2x32xf32>
    %29 = vector.shape_cast %26 : vector<2x32xf32> to vector<1x2x32xf32>
    tpu.vector_store %arg7[%c0_11, %c0_12, %c0_13], %29 {strides = array<i32>} : memref<8x2x32xf32, #tpu.memory_space<vmem>>, vector<1x2x32xf32>,
    %30 = vector.extract_strided_slice %5 {offsets = [2, 0], sizes = [2, 128], strides = [1, 1]} : vector<16x128xf32> to vector<2x128xf32>
    %cst_14 = arith.constant dense<0.000000e+00> : vector<2x128xf32>
    %31 = tpu.matmul %26, %6, %cst_14 {dimension_numbers = #tpu.dot_dimension_numbers<[1], [0], [0], [1], [0, 0, 1, 1], [], []>} : vector<2x32xf32>, vector<32x128xf32>, vector<2x128xf32> -> vector<2x128xf32>
    %32 = arith.addf %30, %31 : vector<2x128xf32>
    %33 = arith.negf %32 : vector<2x128xf32>
    %34 = math.exp %33 : vector<2x128xf32>
    %cst_15 = arith.constant 1.000000e+00 : f32
    %35 = vector.broadcast %cst_15 : f32 to vector<2x128xf32>
    %36 = arith.addf %35, %34 : vector<2x128xf32>
    %37 = arith.divf %35, %36 : vector<2x128xf32>
    %38 = math.tanh %32 : vector<2x128xf32>
    %39 = vector.extract_strided_slice %37 {offsets = [0, 0], sizes = [2, 32], strides = [1, 1]} : vector<2x128xf32> to vector<2x32xf32>
    %40 = vector.extract_strided_slice %37 {offsets = [0, 32], sizes = [2, 32], strides = [1, 1]} : vector<2x128xf32> to vector<2x32xf32>
    %41 = vector.extract_strided_slice %38 {offsets = [0, 64], sizes = [2, 32], strides = [1, 1]} : vector<2x128xf32> to vector<2x32xf32>
    %42 = vector.extract_strided_slice %37 {offsets = [0, 96], sizes = [2, 32], strides = [1, 1]} : vector<2x128xf32> to vector<2x32xf32>
    %43 = arith.mulf %40, %24 : vector<2x32xf32>
    %44 = arith.mulf %39, %41 : vector<2x32xf32>
    %45 = arith.addf %43, %44 : vector<2x32xf32>
    %46 = math.tanh %45 : vector<2x32xf32>
    %47 = arith.mulf %42, %46 : vector<2x32xf32>
    %c1 = arith.constant 1 : index
    %c0_16 = arith.constant 0 : index
    %c0_17 = arith.constant 0 : index
    %48 = vector.load %arg7[%c1, %c0_16, %c0_17] : memref<8x2x32xf32, #tpu.memory_space<vmem>>, vector<1x2x32xf32>
    %49 = vector.shape_cast %48 : vector<1x2x32xf32> to vector<2x32xf32>
    %50 = vector.shape_cast %47 : vector<2x32xf32> to vector<1x2x32xf32>
    tpu.vector_store %arg7[%c1, %c0_16, %c0_17], %50 {strides = array<i32>} : memref<8x2x32xf32, #tpu.memory_space<vmem>>, vector<1x2x32xf32>,
    %51 = vector.extract_strided_slice %5 {offsets = [4, 0], sizes = [2, 128], strides = [1, 1]} : vector<16x128xf32> to vector<2x128xf32>
    %cst_18 = arith.constant dense<0.000000e+00> : vector<2x128xf32>
    %52 = tpu.matmul %47, %6, %cst_18 {dimension_numbers = #tpu.dot_dimension_numbers<[1], [0], [0], [1], [0, 0, 1, 1], [], []>} : vector<2x32xf32>, vector<32x128xf32>, vector<2x128xf32> -> vector<2x128xf32>
    %53 = arith.addf %51, %52 : vector<2x128xf32>
    %54 = arith.negf %53 : vector<2x128xf32>
    %55 = math.exp %54 : vector<2x128xf32>
    %cst_19 = arith.constant 1.000000e+00 : f32
    %56 = vector.broadcast %cst_19 : f32 to vector<2x128xf32>
    %57 = arith.addf %56, %55 : vector<2x128xf32>
    %58 = arith.divf %56, %57 : vector<2x128xf32>
    %59 = math.tanh %53 : vector<2x128xf32>
    %60 = vector.extract_strided_slice %58 {offsets = [0, 0], sizes = [2, 32], strides = [1, 1]} : vector<2x128xf32> to vector<2x32xf32>
    %61 = vector.extract_strided_slice %58 {offsets = [0, 32], sizes = [2, 32], strides = [1, 1]} : vector<2x128xf32> to vector<2x32xf32>
    %62 = vector.extract_strided_slice %59 {offsets = [0, 64], sizes = [2, 32], strides = [1, 1]} : vector<2x128xf32> to vector<2x32xf32>
    %63 = vector.extract_strided_slice %58 {offsets = [0, 96], sizes = [2, 32], strides = [1, 1]} : vector<2x128xf32> to vector<2x32xf32>
    %64 = arith.mulf %61, %45 : vector<2x32xf32>
    %65 = arith.mulf %60, %62 : vector<2x32xf32>
    %66 = arith.addf %64, %65 : vector<2x32xf32>
    %67 = math.tanh %66 : vector<2x32xf32>
    %68 = arith.mulf %63, %67 : vector<2x32xf32>
    %c2 = arith.constant 2 : index
    %c0_20 = arith.constant 0 : index
    %c0_21 = arith.constant 0 : index
    %69 = vector.load %arg7[%c2, %c0_20, %c0_21] : memref<8x2x32xf32, #tpu.memory_space<vmem>>, vector<1x2x32xf32>
    %70 = vector.shape_cast %69 : vector<1x2x32xf32> to vector<2x32xf32>
    %71 = vector.shape_cast %68 : vector<2x32xf32> to vector<1x2x32xf32>
    tpu.vector_store %arg7[%c2, %c0_20, %c0_21], %71 {strides = array<i32>} : memref<8x2x32xf32, #tpu.memory_space<vmem>>, vector<1x2x32xf32>,
    %72 = vector.extract_strided_slice %5 {offsets = [6, 0], sizes = [2, 128], strides = [1, 1]} : vector<16x128xf32> to vector<2x128xf32>
    %cst_22 = arith.constant dense<0.000000e+00> : vector<2x128xf32>
    %73 = tpu.matmul %68, %6, %cst_22 {dimension_numbers = #tpu.dot_dimension_numbers<[1], [0], [0], [1], [0, 0, 1, 1], [], []>} : vector<2x32xf32>, vector<32x128xf32>, vector<2x128xf32> -> vector<2x128xf32>
    %74 = arith.addf %72, %73 : vector<2x128xf32>
    %75 = arith.negf %74 : vector<2x128xf32>
    %76 = math.exp %75 : vector<2x128xf32>
    %cst_23 = arith.constant 1.000000e+00 : f32
    %77 = vector.broadcast %cst_23 : f32 to vector<2x128xf32>
    %78 = arith.addf %77, %76 : vector<2x128xf32>
    %79 = arith.divf %77, %78 : vector<2x128xf32>
    %80 = math.tanh %74 : vector<2x128xf32>
    %81 = vector.extract_strided_slice %79 {offsets = [0, 0], sizes = [2, 32], strides = [1, 1]} : vector<2x128xf32> to vector<2x32xf32>
    %82 = vector.extract_strided_slice %79 {offsets = [0, 32], sizes = [2, 32], strides = [1, 1]} : vector<2x128xf32> to vector<2x32xf32>
    %83 = vector.extract_strided_slice %80 {offsets = [0, 64], sizes = [2, 32], strides = [1, 1]} : vector<2x128xf32> to vector<2x32xf32>
    %84 = vector.extract_strided_slice %79 {offsets = [0, 96], sizes = [2, 32], strides = [1, 1]} : vector<2x128xf32> to vector<2x32xf32>
    %85 = arith.mulf %82, %66 : vector<2x32xf32>
    %86 = arith.mulf %81, %83 : vector<2x32xf32>
    %87 = arith.addf %85, %86 : vector<2x32xf32>
    %88 = math.tanh %87 : vector<2x32xf32>
    %89 = arith.mulf %84, %88 : vector<2x32xf32>
    %c3 = arith.constant 3 : index
    %c0_24 = arith.constant 0 : index
    %c0_25 = arith.constant 0 : index
    %90 = vector.load %arg7[%c3, %c0_24, %c0_25] : memref<8x2x32xf32, #tpu.memory_space<vmem>>, vector<1x2x32xf32>
    %91 = vector.shape_cast %90 : vector<1x2x32xf32> to vector<2x32xf32>
    %92 = vector.shape_cast %89 : vector<2x32xf32> to vector<1x2x32xf32>
    tpu.vector_store %arg7[%c3, %c0_24, %c0_25], %92 {strides = array<i32>} : memref<8x2x32xf32, #tpu.memory_space<vmem>>, vector<1x2x32xf32>,
    %93 = vector.extract_strided_slice %5 {offsets = [8, 0], sizes = [2, 128], strides = [1, 1]} : vector<16x128xf32> to vector<2x128xf32>
    %cst_26 = arith.constant dense<0.000000e+00> : vector<2x128xf32>
    %94 = tpu.matmul %89, %6, %cst_26 {dimension_numbers = #tpu.dot_dimension_numbers<[1], [0], [0], [1], [0, 0, 1, 1], [], []>} : vector<2x32xf32>, vector<32x128xf32>, vector<2x128xf32> -> vector<2x128xf32>
    %95 = arith.addf %93, %94 : vector<2x128xf32>
    %96 = arith.negf %95 : vector<2x128xf32>
    %97 = math.exp %96 : vector<2x128xf32>
    %cst_27 = arith.constant 1.000000e+00 : f32
    %98 = vector.broadcast %cst_27 : f32 to vector<2x128xf32>
    %99 = arith.addf %98, %97 : vector<2x128xf32>
    %100 = arith.divf %98, %99 : vector<2x128xf32>
    %101 = math.tanh %95 : vector<2x128xf32>
    %102 = vector.extract_strided_slice %100 {offsets = [0, 0], sizes = [2, 32], strides = [1, 1]} : vector<2x128xf32> to vector<2x32xf32>
    %103 = vector.extract_strided_slice %100 {offsets = [0, 32], sizes = [2, 32], strides = [1, 1]} : vector<2x128xf32> to vector<2x32xf32>
    %104 = vector.extract_strided_slice %101 {offsets = [0, 64], sizes = [2, 32], strides = [1, 1]} : vector<2x128xf32> to vector<2x32xf32>
    %105 = vector.extract_strided_slice %100 {offsets = [0, 96], sizes = [2, 32], strides = [1, 1]} : vector<2x128xf32> to vector<2x32xf32>
    %106 = arith.mulf %103, %87 : vector<2x32xf32>
    %107 = arith.mulf %102, %104 : vector<2x32xf32>
    %108 = arith.addf %106, %107 : vector<2x32xf32>
    %109 = math.tanh %108 : vector<2x32xf32>
    %110 = arith.mulf %105, %109 : vector<2x32xf32>
    %c4 = arith.constant 4 : index
    %c0_28 = arith.constant 0 : index
    %c0_29 = arith.constant 0 : index
    %111 = vector.load %arg7[%c4, %c0_28, %c0_29] : memref<8x2x32xf32, #tpu.memory_space<vmem>>, vector<1x2x32xf32>
    %112 = vector.shape_cast %111 : vector<1x2x32xf32> to vector<2x32xf32>
    %113 = vector.shape_cast %110 : vector<2x32xf32> to vector<1x2x32xf32>
    tpu.vector_store %arg7[%c4, %c0_28, %c0_29], %113 {strides = array<i32>} : memref<8x2x32xf32, #tpu.memory_space<vmem>>, vector<1x2x32xf32>,
    %114 = vector.extract_strided_slice %5 {offsets = [10, 0], sizes = [2, 128], strides = [1, 1]} : vector<16x128xf32> to vector<2x128xf32>
    %cst_30 = arith.constant dense<0.000000e+00> : vector<2x128xf32>
    %115 = tpu.matmul %110, %6, %cst_30 {dimension_numbers = #tpu.dot_dimension_numbers<[1], [0], [0], [1], [0, 0, 1, 1], [], []>} : vector<2x32xf32>, vector<32x128xf32>, vector<2x128xf32> -> vector<2x128xf32>
    %116 = arith.addf %114, %115 : vector<2x128xf32>
    %117 = arith.negf %116 : vector<2x128xf32>
    %118 = math.exp %117 : vector<2x128xf32>
    %cst_31 = arith.constant 1.000000e+00 : f32
    %119 = vector.broadcast %cst_31 : f32 to vector<2x128xf32>
    %120 = arith.addf %119, %118 : vector<2x128xf32>
    %121 = arith.divf %119, %120 : vector<2x128xf32>
    %122 = math.tanh %116 : vector<2x128xf32>
    %123 = vector.extract_strided_slice %121 {offsets = [0, 0], sizes = [2, 32], strides = [1, 1]} : vector<2x128xf32> to vector<2x32xf32>
    %124 = vector.extract_strided_slice %121 {offsets = [0, 32], sizes = [2, 32], strides = [1, 1]} : vector<2x128xf32> to vector<2x32xf32>
    %125 = vector.extract_strided_slice %122 {offsets = [0, 64], sizes = [2, 32], strides = [1, 1]} : vector<2x128xf32> to vector<2x32xf32>
    %126 = vector.extract_strided_slice %121 {offsets = [0, 96], sizes = [2, 32], strides = [1, 1]} : vector<2x128xf32> to vector<2x32xf32>
    %127 = arith.mulf %124, %108 : vector<2x32xf32>
    %128 = arith.mulf %123, %125 : vector<2x32xf32>
    %129 = arith.addf %127, %128 : vector<2x32xf32>
    %130 = math.tanh %129 : vector<2x32xf32>
    %131 = arith.mulf %126, %130 : vector<2x32xf32>
    %c5 = arith.constant 5 : index
    %c0_32 = arith.constant 0 : index
    %c0_33 = arith.constant 0 : index
    %132 = vector.load %arg7[%c5, %c0_32, %c0_33] : memref<8x2x32xf32, #tpu.memory_space<vmem>>, vector<1x2x32xf32>
    %133 = vector.shape_cast %132 : vector<1x2x32xf32> to vector<2x32xf32>
    %134 = vector.shape_cast %131 : vector<2x32xf32> to vector<1x2x32xf32>
    tpu.vector_store %arg7[%c5, %c0_32, %c0_33], %134 {strides = array<i32>} : memref<8x2x32xf32, #tpu.memory_space<vmem>>, vector<1x2x32xf32>,
    %135 = vector.extract_strided_slice %5 {offsets = [12, 0], sizes = [2, 128], strides = [1, 1]} : vector<16x128xf32> to vector<2x128xf32>
    %cst_34 = arith.constant dense<0.000000e+00> : vector<2x128xf32>
    %136 = tpu.matmul %131, %6, %cst_34 {dimension_numbers = #tpu.dot_dimension_numbers<[1], [0], [0], [1], [0, 0, 1, 1], [], []>} : vector<2x32xf32>, vector<32x128xf32>, vector<2x128xf32> -> vector<2x128xf32>
    %137 = arith.addf %135, %136 : vector<2x128xf32>
    %138 = arith.negf %137 : vector<2x128xf32>
    %139 = math.exp %138 : vector<2x128xf32>
    %cst_35 = arith.constant 1.000000e+00 : f32
    %140 = vector.broadcast %cst_35 : f32 to vector<2x128xf32>
    %141 = arith.addf %140, %139 : vector<2x128xf32>
    %142 = arith.divf %140, %141 : vector<2x128xf32>
    %143 = math.tanh %137 : vector<2x128xf32>
    %144 = vector.extract_strided_slice %142 {offsets = [0, 0], sizes = [2, 32], strides = [1, 1]} : vector<2x128xf32> to vector<2x32xf32>
    %145 = vector.extract_strided_slice %142 {offsets = [0, 32], sizes = [2, 32], strides = [1, 1]} : vector<2x128xf32> to vector<2x32xf32>
    %146 = vector.extract_strided_slice %143 {offsets = [0, 64], sizes = [2, 32], strides = [1, 1]} : vector<2x128xf32> to vector<2x32xf32>
    %147 = vector.extract_strided_slice %142 {offsets = [0, 96], sizes = [2, 32], strides = [1, 1]} : vector<2x128xf32> to vector<2x32xf32>
    %148 = arith.mulf %145, %129 : vector<2x32xf32>
    %149 = arith.mulf %144, %146 : vector<2x32xf32>
    %150 = arith.addf %148, %149 : vector<2x32xf32>
    %151 = math.tanh %150 : vector<2x32xf32>
    %152 = arith.mulf %147, %151 : vector<2x32xf32>
    %c6 = arith.constant 6 : index
    %c0_36 = arith.constant 0 : index
    %c0_37 = arith.constant 0 : index
    %153 = vector.load %arg7[%c6, %c0_36, %c0_37] : memref<8x2x32xf32, #tpu.memory_space<vmem>>, vector<1x2x32xf32>
    %154 = vector.shape_cast %153 : vector<1x2x32xf32> to vector<2x32xf32>
    %155 = vector.shape_cast %152 : vector<2x32xf32> to vector<1x2x32xf32>
    tpu.vector_store %arg7[%c6, %c0_36, %c0_37], %155 {strides = array<i32>} : memref<8x2x32xf32, #tpu.memory_space<vmem>>, vector<1x2x32xf32>,
    %156 = vector.extract_strided_slice %5 {offsets = [14, 0], sizes = [2, 128], strides = [1, 1]} : vector<16x128xf32> to vector<2x128xf32>
    %cst_38 = arith.constant dense<0.000000e+00> : vector<2x128xf32>
    %157 = tpu.matmul %152, %6, %cst_38 {dimension_numbers = #tpu.dot_dimension_numbers<[1], [0], [0], [1], [0, 0, 1, 1], [], []>} : vector<2x32xf32>, vector<32x128xf32>, vector<2x128xf32> -> vector<2x128xf32>
    %158 = arith.addf %156, %157 : vector<2x128xf32>
    %159 = arith.negf %158 : vector<2x128xf32>
    %160 = math.exp %159 : vector<2x128xf32>
    %cst_39 = arith.constant 1.000000e+00 : f32
    %161 = vector.broadcast %cst_39 : f32 to vector<2x128xf32>
    %162 = arith.addf %161, %160 : vector<2x128xf32>
    %163 = arith.divf %161, %162 : vector<2x128xf32>
    %164 = math.tanh %158 : vector<2x128xf32>
    %165 = vector.extract_strided_slice %163 {offsets = [0, 0], sizes = [2, 32], strides = [1, 1]} : vector<2x128xf32> to vector<2x32xf32>
    %166 = vector.extract_strided_slice %163 {offsets = [0, 32], sizes = [2, 32], strides = [1, 1]} : vector<2x128xf32> to vector<2x32xf32>
    %167 = vector.extract_strided_slice %164 {offsets = [0, 64], sizes = [2, 32], strides = [1, 1]} : vector<2x128xf32> to vector<2x32xf32>
    %168 = vector.extract_strided_slice %163 {offsets = [0, 96], sizes = [2, 32], strides = [1, 1]} : vector<2x128xf32> to vector<2x32xf32>
    %169 = arith.mulf %166, %150 : vector<2x32xf32>
    %170 = arith.mulf %165, %167 : vector<2x32xf32>
    %171 = arith.addf %169, %170 : vector<2x32xf32>
    %172 = math.tanh %171 : vector<2x32xf32>
    %173 = arith.mulf %168, %172 : vector<2x32xf32>
    %c7 = arith.constant 7 : index
    %c0_40 = arith.constant 0 : index
    %c0_41 = arith.constant 0 : index
    %174 = vector.load %arg7[%c7, %c0_40, %c0_41] : memref<8x2x32xf32, #tpu.memory_space<vmem>>, vector<1x2x32xf32>
    %175 = vector.shape_cast %174 : vector<1x2x32xf32> to vector<2x32xf32>
    %176 = vector.shape_cast %173 : vector<2x32xf32> to vector<1x2x32xf32>
    tpu.vector_store %arg7[%c7, %c0_40, %c0_41], %176 {strides = array<i32>} : memref<8x2x32xf32, #tpu.memory_space<vmem>>, vector<1x2x32xf32>,
    %177 = vector.shape_cast %173 : vector<2x32xf32> to vector<1x2x32xf32>
    %c0_42 = arith.constant 0 : index
    %c0_43 = arith.constant 0 : index
    %c0_44 = arith.constant 0 : index
    %178 = vector.load %arg8[%c0_42, %c0_43, %c0_44] : memref<1x2x32xf32, #tpu.memory_space<vmem>>, vector<1x2x32xf32>
    tpu.vector_store %arg8[%c0_42, %c0_43, %c0_44], %177 {strides = array<i32>} : memref<1x2x32xf32, #tpu.memory_space<vmem>>, vector<1x2x32xf32>,
    %179 = vector.shape_cast %171 : vector<2x32xf32> to vector<1x2x32xf32>
    %c0_45 = arith.constant 0 : index
    %c0_46 = arith.constant 0 : index
    %c0_47 = arith.constant 0 : index
    %180 = vector.load %arg9[%c0_45, %c0_46, %c0_47] : memref<1x2x32xf32, #tpu.memory_space<vmem>>, vector<1x2x32xf32>
    tpu.vector_store %arg9[%c0_45, %c0_46, %c0_47], %179 {strides = array<i32>} : memref<1x2x32xf32, #tpu.memory_space<vmem>>, vector<1x2x32xf32>,
    %c0_48 = arith.constant 0 : index
    %c0_49 = arith.constant 0 : index
    %181 = vector.load %arg4[%c0_48, %c0_49] : memref<32x4xf32, #tpu.memory_space<vmem>>, vector<32x4xf32>
    %cst_50 = arith.constant dense<0.000000e+00> : vector<2x4xf32>
    %182 = tpu.matmul %173, %181, %cst_50 {dimension_numbers = #tpu.dot_dimension_numbers<[1], [0], [0], [1], [0, 0, 1, 1], [], []>} : vector<2x32xf32>, vector<32x4xf32>, vector<2x4xf32> -> vector<2x4xf32>
    %c0_51 = arith.constant 0 : index
    %c0_52 = arith.constant 0 : index
    %183 = vector.load %arg5[%c0_51, %c0_52] : memref<1x4xf32, #tpu.memory_space<vmem>>, vector<1x4xf32>
    %184 = vector.broadcast %183 : vector<1x4xf32> to vector<2x4xf32>
    %185 = arith.addf %182, %184 : vector<2x4xf32>
    %186 = arith.negf %185 : vector<2x4xf32>
    %187 = math.exp %186 : vector<2x4xf32>
    %cst_53 = arith.constant 1.000000e+00 : f32
    %188 = vector.broadcast %cst_53 : f32 to vector<2x4xf32>
    %189 = arith.addf %188, %187 : vector<2x4xf32>
    %190 = arith.divf %188, %189 : vector<2x4xf32>
    %c0_54 = arith.constant 0 : index
    %c0_55 = arith.constant 0 : index
    %191 = vector.load %arg6[%c0_54, %c0_55] : memref<2x4xf32, #tpu.memory_space<vmem>>, vector<2x4xf32>
    tpu.vector_store %arg6[%c0_54, %c0_55], %190 {strides = array<i32>} : memref<2x4xf32, #tpu.memory_space<vmem>>, vector<2x4xf32>,
    return
  }
}

</mosaic_0001>

<bundles_post_ra>
// kernel: tpu_custom_call.1
= control target key start
LH: loop header
LB: loop body
LE: loop exit
PB: predicated region body
PF: predicated region fallthrough
CT: control target
= control target key end

     0   :  { %15 = vsyncpa [#allocation3], 0  ;;  %s1181_s0 = inlined_call_operand.vmem [shape: f32[16,8], index: 0, kind: input, shape index: {}]   ;;  %s1182_s1 = inlined_call_operand.vmem [shape: f32[8,128], index: 1, kind: input, shape index: {}]   ;;  %s1183_s2 = inlined_call_operand.vmem [shape: f32[32,128], index: 2, kind: input, shape index: {}]   ;;  %s1184_s3 = inlined_call_operand.vmem [shape: f32[1,128], index: 3, kind: input, shape index: {}]   ;;  %s1185_s4 = inlined_call_operand.vmem [shape: f32[32,4], index: 4, kind: input, shape index: {}]   ;;  %s1186_s5 = inlined_call_operand.vmem [shape: f32[1,4], index: 5, kind: input, shape index: {}]   ;;  %s1187_s6 = inlined_call_operand.hbm [shape: f32[2,4], index: 6, kind: output, shape index: {0}]   ;;  %s1188_s7 = inlined_call_operand.hbm [shape: f32[8,2,32], index: 7, kind: output, shape index: {1}]   ;;  %s1189_s8 = inlined_call_operand.hbm [shape: f32[1,2,32], index: 8, kind: output, shape index: {2}]   ;;  %s1190_s9 = inlined_call_operand.hbm [shape: f32[1,2,32], index: 9, kind: output, shape index: {3}]  }
   0x1   :  { %16 = vsyncpa [#allocation5], 0  ;;  %v70_v0 = vld [vmem:[%s1183_s2 + $0x18] sm:$0xff]  ;;  %v69_v1 = vld [vmem:[%s1183_s2 + $0x10] sm:$0xff]  ;;  %vm37_vm0 = vcmask 64512  }
   0x2   :  { %v32_v2 = vld [vmem:[%s1182_s1] sm:$0xff]  ;;  %87 = vmatpush.msra.mxu1 %v70_v0  ;;  %v68_v4 = vld [vmem:[%s1183_s2 + $0x8] sm:$0xff]  ;;  %153 = vmatpush.msra.mxu2 %v70_v0 }
   0x3   :  { %59 = vmatpush.msra.mxu0 %v32_v2  ;;  %v30_v3 = vld [vmem:[%s1181_s0] sm:$0xff]  ;;  %229 = vmatpush.msra.mxu3 %v70_v0 }
   0x4   :  { %783 = vmatmul.msk.f32.vlgmr.msra.gmra.mxu0 %vm37_vm0, %v30_v3  ;;  %88 = vmatpush.msra.mxu1 %v69_v1 }
   0x5   :  { %17 = vsyncpa [#allocation8], 0  ;;  %v67_v5 = vld [vmem:[%s1183_s2] sm:$0xff]  ;;  %154 = vmatpush.msra.mxu2 %v69_v1  ;;  %525 = vmatpush.msrb.mxu0 %v70_v0  ;;  %v983_v6 = vmov 0.0   ;;  %s984_s21 = smov 64   ;;  %vm137_vm5 = vcmask 254976  }
   0x6   :  { %89 = vmatpush.msra.mxu1 %v68_v4  ;;  %230 = vmatpush.msra.mxu3 %v69_v1  ;;  %v1064_v7 = vld [vmem:[%s1184_s3] ss:$0 sm:$0xff]  ;;  %s985_s3 = smov 32   ;;  %vm71_vm6 = vcmask 261120   ;;  %s735_s12 = sshll.u32 %s1188_s7, 4  ;;  %s736_s12 = int_to_ptr.hbm [resolvable:$true] %s735_s12 }
   0x7   :  { %155 = vmatpush.msra.mxu2 %v68_v4  ;;  %526 = vmatpush.msrb.mxu0 %v69_v1  ;;  %s987_s13 = smov [#allocation4]   ;;  %s988_s15 = smov 2  }
   0x8   :  { %90 = vmatpush.msra.mxu1 %v67_v5  ;;  %231 = vmatpush.msra.mxu3 %v68_v4  ;;  %s733_s14 = sshll.u32 %s987_s13, 4  ;;  %s989_s16 = smov [#allocation6]   ;;  %s734_s14 = int_to_ptr.vmem [resolvable:$true] %s733_s14 }
   0x9   :  { %91 = vmatmul.f32.vlgmr.msra.gmra.mxu1 %v983_v6  ;;  %156 = vmatpush.msra.mxu2 %v67_v5  ;;  %s747_s17 = sshll.u32 %s989_s16, 4  ;;  %s749_s20 = sshll.u32 %s1189_s8, 4  ;;  %s748_s17 = int_to_ptr.vmem [resolvable:$true] %s747_s17  ;;  %s750_s20 = int_to_ptr.hbm [resolvable:$true] %s749_s20 }
   0xa   :  { %232 = vmatpush.msra.mxu3 %v67_v5  ;;  %305 = vmatpush.msrb.mxu1 %v70_v0  ;;  %s760_s7 = sshll.u32 %s1190_s9, 4  ;;  %s991_s8 = smov [#allocation2]   ;;  %s761_s7 = int_to_ptr.hbm [resolvable:$true] %s760_s7 }
   0xb   :  { %381 = vmatpush.msrb.mxu2 %v70_v0  ;;  %527 = vmatpush.msrb.mxu0 %v68_v4  ;;  %s723_s9 = sshll.u32 %s991_s8, 4  ;;  %s724_s9 = int_to_ptr.vmem [resolvable:$true] %s723_s9 }
   0xc   :  { %450 = vmatpush.msrb.mxu3 %v70_v0  ;;  %306 = vmatpush.msrb.mxu1 %v69_v1 }
   0xd   :  { %382 = vmatpush.msrb.mxu2 %v69_v1  ;;  %528 = vmatpush.msrb.mxu0 %v67_v5 }
   0xe   :  { %451 = vmatpush.msrb.mxu3 %v69_v1  ;;  %307 = vmatpush.msrb.mxu1 %v68_v4 }
   0xf   :  { %383 = vmatpush.msrb.mxu2 %v68_v4 }
  0x10   :  { %452 = vmatpush.msrb.mxu3 %v68_v4  ;;  %308 = vmatpush.msrb.mxu1 %v67_v5 }
  0x11   :  { %384 = vmatpush.msrb.mxu2 %v67_v5 }
  0x12   :  { %453 = vmatpush.msrb.mxu3 %v67_v5  ;;  %600 = vmatpush.msra.mxu1 %v70_v0 }
  0x14   :  { %601 = vmatpush.msra.mxu1 %v69_v1 }
  0x16   :  { %602 = vmatpush.msra.mxu1 %v68_v4 }
  0x18   :  { %603 = vmatpush.msra.mxu1 %v67_v5 }
  0x81   :  { %v61_v8 = vpop.f32.mrf.mxu0 }
  0x82   :  { %v1067_v9 = vadd.f32 %v1064_v7, %v61_v8 }
  0x86   :  { %v92_v10 = vpop.f32.mrf.mxu1 }
  0x87   :  { %v95_v11 = vadd.f32 %v92_v10, %v1067_v9 }
  0x89   :  { %813 = vtanh.f32 %v95_v11  ;;  %v785_v13 = vmul.f32 -1.442695, %v95_v11 }
  0x8b   :  { %815 = vpow2.f32 %v785_v13 }
  0x8f   :  { %v814_v12 = vpop.eup %813 }
  0x90   :  { %118 = vrot.lane.b32.xlu0 %v814_v12, %s984_s21 }
  0x91   :  { %v816_v14 = vpop.eup %815 }
  0x92   :  { %v99_v15 = vadd.f32 1.0, %v816_v14 }
  0x94   :  { %817 = vrcp.f32 %v99_v15  ;;  %v111_v21 = vand.u32 2147483648, %v99_v15  ;;  %vm105_vm2 = vweird.f32 %v99_v15  ;;  %v109_v22 = vand.u32 2147483647, %v99_v15 }
  0x96   :  { %v112_v24 = vor.u32 1.1754944e-38, %v111_v21  ;;  %vm110_vm4 = vcmp.eq.f32.partialorder %v109_v22, 8.507059e+37 }
  0x9a   :  { %v818_v16 = vpop.eup %817 }
  0x9b   :  { %v101_v17 = vmul.f32 %v818_v16, %v99_v15  ;;  %vm106_vm1 = vweird.f32 %v818_v16 }
  0x9c   :  { %vm107_vm3 = vmor %vm105_vm2, %vm106_vm1 }
  0x9d   :  { %v102_v18 = vsub.f32 1.0, %v101_v17 }
  0x9f   :  { %v103_v19 = vmul.f32 %v818_v16, %v102_v18 }
  0xa1   :  { %v104_v20 = vadd.f32 %v818_v16, %v103_v19 }
  0xa3   :  { %v108_v23 = vsel %vm107_vm3, %v818_v16, %v104_v20 }
  0xa4   :  { %v113_v26 = vsel %vm110_vm4, %v112_v24, %v108_v23 }
  0xa5   :  { %v116_v28 = vmul.f32 0.0, %v113_v26 }
 0x102   :  { %v119_v25 = vpop.permute.xlu0 %118 }
 0x103   :  { %v121_v27 = vmul.f32 %v119_v25, %v113_v26 }
 0x105   :  { %123 = vrot.lane.b32.xlu0 %v121_v27, %s985_s3 }
 0x177   :  { %v124_v29 = vpop.permute.xlu0 %123 }
 0x178   :  { %v126_v30 = vadd.f32 %v124_v29, %v116_v28 }
 0x17a   :  { %819 = vtanh.f32 %v126_v30  ;;  %v186_v54 = vrot.slane %v126_v30, 6 }
 0x180   :  { %v820_v31 = vpop.eup %819 }
 0x181   :  { %129 = vrot.lane.b32.xlu1 %v820_v31, %s984_s21 }
 0x1f3   :  { %v130_v32 = vpop.permute.xlu1 %129 }
 0x1f4   :  { %v132_v33 = vmul.f32 %v130_v32, %v113_v26 }
 0x1f6   :  { %134 = vrot.lane.b32.xlu1 %v132_v33, %s985_s3 }
 0x268   :  { %v135_v34 = vpop.permute.xlu1 %134 }
 0x269   :  { %138 = vst.msk [vmem:[#allocation4] sm:$0x3] %vm137_vm5, %v135_v34  ;;  %786 = vmatmul.msk.f32.vlgmr.msra.gmra.mxu2 %vm71_vm6, %v135_v34 }
 0x2ec   :  { %v158_v35 = vpop.f32.mrf.mxu2 }
 0x2ed   :  { %v162_v36 = vrot.slane %v158_v35, 6 }
 0x2ef   :  { %v164_v37 = vadd.f32 %v162_v36, %v1067_v9 }
 0x2f1   :  { %821 = vtanh.f32 %v164_v37  ;;  %v787_v39 = vmul.f32 -1.442695, %v164_v37 }
 0x2f3   :  { %823 = vpow2.f32 %v787_v39 }
 0x2f7   :  { %v822_v38 = vpop.eup %821 }
 0x2f8   :  { %190 = vrot.lane.b32.xlu2 %v822_v38, %s984_s21 }
 0x2f9   :  { %v824_v40 = vpop.eup %823 }
 0x2fa   :  { %v168_v41 = vadd.f32 1.0, %v824_v40 }
 0x2fc   :  { %825 = vrcp.f32 %v168_v41  ;;  %v180_v47 = vand.u32 2147483648, %v168_v41  ;;  %vm174_vm8 = vweird.f32 %v168_v41  ;;  %v178_v48 = vand.u32 2147483647, %v168_v41 }
 0x2fe   :  { %v181_v50 = vor.u32 1.1754944e-38, %v180_v47  ;;  %vm179_vm10 = vcmp.eq.f32.partialorder %v178_v48, 8.507059e+37 }
 0x302   :  { %v826_v42 = vpop.eup %825 }
 0x303   :  { %v170_v43 = vmul.f32 %v826_v42, %v168_v41  ;;  %vm175_vm7 = vweird.f32 %v826_v42 }
 0x304   :  { %vm176_vm9 = vmor %vm174_vm8, %vm175_vm7 }
 0x305   :  { %v171_v44 = vsub.f32 1.0, %v170_v43 }
 0x307   :  { %v172_v45 = vmul.f32 %v826_v42, %v171_v44 }
 0x309   :  { %v173_v46 = vadd.f32 %v826_v42, %v172_v45 }
 0x30b   :  { %v177_v49 = vsel %vm176_vm9, %v826_v42, %v173_v46 }
 0x30c   :  { %v182_v52 = vsel %vm179_vm10, %v181_v50, %v177_v49 }
 0x30d   :  { %v188_v55 = vmul.f32 %v186_v54, %v182_v52 }
 0x352   :  { %v191_v51 = vpop.permute.xlu2 %190 }
 0x353   :  { %v193_v53 = vmul.f32 %v191_v51, %v182_v52 }
 0x355   :  { %195 = vrot.lane.b32.xlu2 %v193_v53, %s985_s3 }
 0x3af   :  { %v196_v56 = vpop.permute.xlu2 %195 }
 0x3b0   :  { %v198_v57 = vadd.f32 %v196_v56, %v188_v55  ;;  %v31_v55 = vld [vmem:[%s1181_s0 + $0x8] sm:$0xff]  ;;  %s986_s0 = smov 96  }
 0x3b1   :  { %784 = vmatmul.msk.f32.gmra.mxu0 %vm37_vm0, %v31_v55 }
 0x3b2   :  { %827 = vtanh.f32 %v198_v57  ;;  %v262_v20 = vrot.slane %v198_v57, 6 }
 0x3b8   :  { %v828_v58 = vpop.eup %827 }
 0x3b9   :  { %201 = vrot.lane.b32.xlu0 %v828_v58, %s984_s21 }
 0x42b   :  { %v202_v59 = vpop.permute.xlu0 %201 }
 0x42c   :  { %v1080_v60 = vmul.f32 %v202_v59, %v182_v52 }
 0x42e   :  { %v212_v61 = vrot.slane %v1080_v60, 2  ;;  %v64_v57 = vpop.f32.mrf.mxu0 }
 0x42f   :  { %v1108_v58 = vadd.f32 %v1064_v7, %v64_v57 }
 0x430   :  { %213 = vrot.lane.b32.xlu1 %v212_v61, %s985_s3 }
 0x4a2   :  { %v214_v62 = vpop.permute.xlu1 %213 }
 0x4a3   :  { %788 = vmatmul.msk.f32.vlgmr.msra.gmra.mxu3 %vm71_vm6, %v214_v62 }
 0x526   :  { %v234_v63 = vpop.f32.mrf.mxu3 }
 0x527   :  { %v238_v0 = vrot.slane %v234_v63, 4 }
 0x529   :  { %v240_v1 = vadd.f32 %v238_v0, %v1067_v9 }
 0x52b   :  { %829 = vtanh.f32 %v240_v1  ;;  %v789_v3 = vmul.f32 -1.442695, %v240_v1 }
 0x52d   :  { %831 = vpow2.f32 %v789_v3 }
 0x531   :  { %v830_v2 = vpop.eup %829 }
 0x532   :  { %266 = vrot.lane.b32.xlu2 %v830_v2, %s984_s21 }
 0x533   :  { %v832_v4 = vpop.eup %831 }
 0x534   :  { %v244_v5 = vadd.f32 1.0, %v832_v4 }
 0x536   :  { %833 = vrcp.f32 %v244_v5  ;;  %v256_v13 = vand.u32 2147483648, %v244_v5  ;;  %vm250_vm12 = vweird.f32 %v244_v5  ;;  %v254_v14 = vand.u32 2147483647, %v244_v5 }
 0x538   :  { %v257_v16 = vor.u32 1.1754944e-38, %v256_v13  ;;  %vm255_vm14 = vcmp.eq.f32.partialorder %v254_v14, 8.507059e+37 }
 0x53c   :  { %v834_v6 = vpop.eup %833 }
 0x53d   :  { %v246_v8 = vmul.f32 %v834_v6, %v244_v5  ;;  %vm251_vm11 = vweird.f32 %v834_v6 }
 0x53e   :  { %vm252_vm13 = vmor %vm250_vm12, %vm251_vm11 }
 0x53f   :  { %v247_v10 = vsub.f32 1.0, %v246_v8 }
 0x541   :  { %v248_v11 = vmul.f32 %v834_v6, %v247_v10 }
 0x543   :  { %v249_v12 = vadd.f32 %v834_v6, %v248_v11 }
 0x545   :  { %v253_v15 = vsel %vm252_vm13, %v834_v6, %v249_v12 }
 0x546   :  { %v258_v18 = vsel %vm255_vm14, %v257_v16, %v253_v15 }
 0x547   :  { %v264_v21 = vmul.f32 %v262_v20, %v258_v18 }
 0x58c   :  { %v267_v17 = vpop.permute.xlu2 %266 }
 0x58d   :  { %v269_v19 = vmul.f32 %v267_v17, %v258_v18 }
 0x58f   :  { %271 = vrot.lane.b32.xlu0 %v269_v19, %s985_s3 }
 0x601   :  { %v272_v22 = vpop.permute.xlu0 %271 }
 0x602   :  { %v274_v23 = vadd.f32 %v272_v22, %v264_v21 }
 0x604   :  { %835 = vtanh.f32 %v274_v23  ;;  %v338_v47 = vrot.slane %v274_v23, 6 }
 0x60a   :  { %v836_v24 = vpop.eup %835 }
 0x60b   :  { %277 = vrot.lane.b32.xlu1 %v836_v24, %s984_s21 }
 0x67d   :  { %v278_v25 = vpop.permute.xlu1 %277 }
 0x67e   :  { %v1089_v26 = vmul.f32 %v278_v25, %v258_v18 }
 0x680   :  { %v288_v27 = vrot.slane %v1089_v26, 4 }
 0x682   :  { %289 = vrot.lane.b32.xlu2 %v288_v27, %s985_s3 }
 0x6dc   :  { %v290_v28 = vpop.permute.xlu2 %289 }
 0x6dd   :  { %790 = vmatmul.msk.f32.vlgmr.msrb.gmra.mxu1 %vm71_vm6, %v290_v28 }
 0x75a   :  { %v310_v29 = vpop.f32.mrf.mxu1 }
 0x75b   :  { %v314_v30 = vrot.slane %v310_v29, 2 }
 0x75d   :  { %v316_v31 = vadd.f32 %v314_v30, %v1067_v9 }
 0x75f   :  { %837 = vtanh.f32 %v316_v31  ;;  %v791_v33 = vmul.f32 -1.442695, %v316_v31 }
 0x761   :  { %839 = vpow2.f32 %v791_v33 }
 0x765   :  { %v838_v32 = vpop.eup %837 }
 0x766   :  { %342 = vrot.lane.b32.xlu0 %v838_v32, %s984_s21 }
 0x767   :  { %v840_v34 = vpop.eup %839 }
 0x768   :  { %v320_v35 = vadd.f32 1.0, %v840_v34 }
 0x76a   :  { %841 = vrcp.f32 %v320_v35  ;;  %v332_v41 = vand.u32 2147483648, %v320_v35  ;;  %vm326_vm1 = vweird.f32 %v320_v35  ;;  %v330_v42 = vand.u32 2147483647, %v320_v35 }
 0x76c   :  { %v333_v43 = vor.u32 1.1754944e-38, %v332_v41  ;;  %vm331_vm3 = vcmp.eq.f32.partialorder %v330_v42, 8.507059e+37 }
 0x770   :  { %v842_v36 = vpop.eup %841 }
 0x771   :  { %v322_v37 = vmul.f32 %v842_v36, %v320_v35  ;;  %vm327_vm15 = vweird.f32 %v842_v36 }
 0x772   :  { %vm328_vm2 = vmor %vm326_vm1, %vm327_vm15 }
 0x773   :  { %v323_v38 = vsub.f32 1.0, %v322_v37 }
 0x775   :  { %v324_v39 = vmul.f32 %v842_v36, %v323_v38 }
 0x777   :  { %v325_v40 = vadd.f32 %v842_v36, %v324_v39 }
 0x779   :  { %v329_v9 = vsel %vm328_vm2, %v842_v36, %v325_v40 }
 0x77a   :  { %v334_v45 = vsel %vm331_vm3, %v333_v43, %v329_v9 }
 0x77b   :  { %v340_v48 = vmul.f32 %v338_v47, %v334_v45 }
 0x7d8   :  { %v343_v44 = vpop.permute.xlu0 %342 }
 0x7d9   :  { %v345_v46 = vmul.f32 %v343_v44, %v334_v45 }
 0x7db   :  { %347 = vrot.lane.b32.xlu1 %v345_v46, %s985_s3 }
 0x84d   :  { %v348_v49 = vpop.permute.xlu1 %347 }
 0x84e   :  { %v350_v50 = vadd.f32 %v348_v49, %v340_v48 }
 0x850   :  { %843 = vtanh.f32 %v350_v50  ;;  %v411_v15 = vrot.slane %v350_v50, 6 }
 0x856   :  { %v844_v51 = vpop.eup %843 }
 0x857   :  { %353 = vrot.lane.b32.xlu2 %v844_v51, %s984_s21 }
 0x8b1   :  { %v354_v52 = vpop.permute.xlu2 %353 }
 0x8b2   :  { %v1098_v53 = vmul.f32 %v354_v52, %v334_v45 }
 0x8b4   :  { %v364_v54 = vrot.slane %v1098_v53, 6 }
 0x8b6   :  { %365 = vrot.lane.b32.xlu0 %v364_v54, %s985_s3 }
 0x928   :  { %v366_v56 = vpop.permute.xlu0 %365 }
 0x929   :  { %792 = vmatmul.msk.f32.vlgmr.msrb.gmra.mxu2 %vm71_vm6, %v366_v56 }
 0x9ac   :  { %v386_v59 = vpop.f32.mrf.mxu2 }
 0x9ad   :  { %v389_v61 = vadd.f32 %v386_v59, %v1108_v58 }
 0x9af   :  { %845 = vtanh.f32 %v389_v61  ;;  %v793_v63 = vmul.f32 -1.442695, %v389_v61 }
 0x9b1   :  { %847 = vpow2.f32 %v793_v63 }
 0x9b5   :  { %v846_v62 = vpop.eup %845 }
 0x9b6   :  { %415 = vrot.lane.b32.xlu1 %v846_v62, %s984_s21 }
 0x9b7   :  { %v848_v0 = vpop.eup %847 }
 0x9b8   :  { %v393_v1 = vadd.f32 1.0, %v848_v0 }
 0x9ba   :  { %849 = vrcp.f32 %v393_v1  ;;  %v405_v7 = vand.u32 2147483648, %v393_v1  ;;  %vm399_vm4 = vweird.f32 %v393_v1  ;;  %v403_v8 = vand.u32 2147483647, %v393_v1 }
 0x9bc   :  { %v406_v11 = vor.u32 1.1754944e-38, %v405_v7  ;;  %vm404_vm8 = vcmp.eq.f32.partialorder %v403_v8, 8.507059e+37 }
 0x9c0   :  { %v850_v2 = vpop.eup %849 }
 0x9c1   :  { %v395_v3 = vmul.f32 %v850_v2, %v393_v1  ;;  %vm400_vm0 = vweird.f32 %v850_v2 }
 0x9c2   :  { %vm401_vm7 = vmor %vm399_vm4, %vm400_vm0  ;;  %vm210_vm4 = vcmask 257026  }
 0x9c3   :  { %v396_v4 = vsub.f32 1.0, %v395_v3 }
 0x9c5   :  { %v397_v5 = vmul.f32 %v850_v2, %v396_v4 }
 0x9c7   :  { %v398_v6 = vadd.f32 %v850_v2, %v397_v5 }
 0x9c9   :  { %v402_v10 = vsel %vm401_vm7, %v850_v2, %v398_v6  ;;  %vm362_vm7 = vcmask 261126  }
 0x9ca   :  { %v407_v13 = vsel %vm404_vm8, %v406_v11, %v402_v10  ;;  %vm286_vm8 = vcmask 259076  }
 0x9cb   :  { %v413_v16 = vmul.f32 %v411_v15, %v407_v13 }
 0xa28   :  { %v416_v12 = vpop.permute.xlu1 %415 }
 0xa29   :  { %v418_v14 = vmul.f32 %v416_v12, %v407_v13 }
 0xa2b   :  { %420 = vrot.lane.b32.xlu2 %v418_v14, %s985_s3 }
 0xa85   :  { %v421_v17 = vpop.permute.xlu2 %420 }
 0xa86   :  { %v423_v18 = vadd.f32 %v421_v17, %v413_v16 }
 0xa88   :  { %851 = vtanh.f32 %v423_v18  ;;  %v483_v9 = vrot.slane %v423_v18, 6 }
 0xa8e   :  { %v852_v19 = vpop.eup %851 }
 0xa8f   :  { %426 = vrot.lane.b32.xlu0 %v852_v19, %s984_s21 }
 0xb01   :  { %v427_v20 = vpop.permute.xlu0 %426 }
 0xb02   :  { %v429_v21 = vmul.f32 %v427_v20, %v407_v13 }
 0xb04   :  { %431 = vrot.lane.b32.xlu1 %v429_v21, %s985_s3 }
 0xb76   :  { %v432_v22 = vpop.permute.xlu1 %431 }
 0xb77   :  { %435 = vst.msk [vmem:[#allocation4 + $0x8] sm:$0x3] %vm137_vm5, %v432_v22  ;;  %794 = vmatmul.msk.f32.vlgmr.msrb.gmra.mxu3 %vm71_vm6, %v432_v22 }
 0xbfa   :  { %v455_v23 = vpop.f32.mrf.mxu3 }
 0xbfb   :  { %v459_v24 = vrot.slane %v455_v23, 6 }
 0xbfd   :  { %v461_v25 = vadd.f32 %v459_v24, %v1108_v58 }
 0xbff   :  { %853 = vtanh.f32 %v461_v25  ;;  %v795_v28 = vmul.f32 -1.442695, %v461_v25 }
 0xc01   :  { %855 = vpow2.f32 %v795_v28 }
 0xc05   :  { %v854_v27 = vpop.eup %853 }
 0xc06   :  { %487 = vrot.lane.b32.xlu2 %v854_v27, %s984_s21 }
 0xc07   :  { %v856_v29 = vpop.eup %855 }
 0xc08   :  { %v465_v30 = vadd.f32 1.0, %v856_v29 }
 0xc0a   :  { %857 = vrcp.f32 %v465_v30  ;;  %v477_v36 = vand.u32 2147483648, %v465_v30  ;;  %vm471_vm9 = vweird.f32 %v465_v30  ;;  %v475_v37 = vand.u32 2147483647, %v465_v30 }
 0xc0c   :  { %v478_v39 = vor.u32 1.1754944e-38, %v477_v36  ;;  %vm476_vm11 = vcmp.eq.f32.partialorder %v475_v37, 8.507059e+37 }
 0xc10   :  { %v858_v31 = vpop.eup %857 }
 0xc11   :  { %v467_v32 = vmul.f32 %v858_v31, %v465_v30  ;;  %vm472_vm5 = vweird.f32 %v858_v31 }
 0xc12   :  { %vm473_vm10 = vmor %vm471_vm9, %vm472_vm5 }
 0xc13   :  { %v468_v33 = vsub.f32 1.0, %v467_v32 }
 0xc15   :  { %v469_v34 = vmul.f32 %v858_v31, %v468_v33 }
 0xc17   :  { %v470_v35 = vadd.f32 %v858_v31, %v469_v34 }
 0xc19   :  { %v474_v38 = vsel %vm473_vm10, %v858_v31, %v470_v35  ;;  %vm716_vm10 = vcmask 25600  }
 0xc1a   :  { %v479_v41 = vsel %vm476_vm11, %v478_v39, %v474_v38 }
 0xc1b   :  { %v485_v43 = vmul.f32 %v483_v9, %v479_v41 }
 0xc60   :  { %v488_v40 = vpop.permute.xlu2 %487 }
 0xc61   :  { %v490_v42 = vmul.f32 %v488_v40, %v479_v41 }
 0xc63   :  { %492 = vrot.lane.b32.xlu0 %v490_v42, %s985_s3 }
 0xcd5   :  { %v493_v44 = vpop.permute.xlu0 %492 }
 0xcd6   :  { %v495_v45 = vadd.f32 %v493_v44, %v485_v43  ;;  %v667_v44 = vld [vmem:[%s1185_s4 + $0x18] sm:$0xff] }
 0xcd7   :  { %689 = vmatpush.msra.mxu2 %v667_v44 }
 0xcd8   :  { %859 = vtanh.f32 %v495_v45  ;;  %v558_v10 = vrot.slane %v495_v45, 6  ;;  %v666_v45 = vld [vmem:[%s1185_s4 + $0x10] sm:$0xff] }
 0xcd9   :  { %690 = vmatpush.msra.mxu2 %v666_v45 }
 0xcde   :  { %v860_v46 = vpop.eup %859 }
 0xcdf   :  { %498 = vrot.lane.b32.xlu1 %v860_v46, %s984_s21  ;;  %v665_v46 = vld [vmem:[%s1185_s4 + $0x8] sm:$0xff] }
 0xce0   :  { %691 = vmatpush.msra.mxu2 %v665_v46 }
 0xd51   :  { %v499_v47 = vpop.permute.xlu1 %498 }
 0xd52   :  { %v1121_v48 = vmul.f32 %v499_v47, %v479_v41 }
 0xd54   :  { %v508_v49 = vrot.slane %v1121_v48, 2 }
 0xd56   :  { %509 = vrot.lane.b32.xlu2 %v508_v49, %s985_s3 }
 0xdb0   :  { %v510_v50 = vpop.permute.xlu2 %509 }
 0xdb1   :  { %796 = vmatmul.msk.f32.vlgmr.msrb.gmra.mxu0 %vm71_vm6, %v510_v50 }
 0xe2e   :  { %v530_v51 = vpop.f32.mrf.mxu0 }
 0xe2f   :  { %v534_v52 = vrot.slane %v530_v51, 4 }
 0xe31   :  { %v536_v54 = vadd.f32 %v534_v52, %v1108_v58 }
 0xe33   :  { %861 = vtanh.f32 %v536_v54  ;;  %v797_v56 = vmul.f32 -1.442695, %v536_v54 }
 0xe35   :  { %863 = vpow2.f32 %v797_v56 }
 0xe39   :  { %v862_v55 = vpop.eup %861 }
 0xe3a   :  { %562 = vrot.lane.b32.xlu0 %v862_v55, %s984_s21 }
 0xe3b   :  { %v864_v57 = vpop.eup %863 }
 0xe3c   :  { %v540_v59 = vadd.f32 1.0, %v864_v57 }
 0xe3e   :  { %865 = vrcp.f32 %v540_v59  ;;  %v552_v2 = vand.u32 2147483648, %v540_v59  ;;  %vm546_vm13 = vweird.f32 %v540_v59  ;;  %v550_v3 = vand.u32 2147483647, %v540_v59 }
 0xe40   :  { %v553_v5 = vor.u32 1.1754944e-38, %v552_v2  ;;  %vm551_vm15 = vcmp.eq.f32.partialorder %v550_v3, 8.507059e+37 }
 0xe44   :  { %v866_v61 = vpop.eup %865 }
 0xe45   :  { %v542_v62 = vmul.f32 %v866_v61, %v540_v59  ;;  %vm547_vm12 = vweird.f32 %v866_v61 }
 0xe46   :  { %vm548_vm14 = vmor %vm546_vm13, %vm547_vm12 }
 0xe47   :  { %v543_v63 = vsub.f32 1.0, %v542_v62 }
 0xe49   :  { %v544_v0 = vmul.f32 %v866_v61, %v543_v63 }
 0xe4b   :  { %v545_v1 = vadd.f32 %v866_v61, %v544_v0 }
 0xe4d   :  { %v549_v4 = vsel %vm548_vm14, %v866_v61, %v545_v1 }
 0xe4e   :  { %v554_v7 = vsel %vm551_vm15, %v553_v5, %v549_v4 }
 0xe4f   :  { %v560_v11 = vmul.f32 %v558_v10, %v554_v7 }
 0xeac   :  { %v563_v6 = vpop.permute.xlu0 %562 }
 0xead   :  { %v565_v8 = vmul.f32 %v563_v6, %v554_v7 }
 0xeaf   :  { %567 = vrot.lane.b32.xlu1 %v565_v8, %s985_s3 }
 0xf21   :  { %v568_v12 = vpop.permute.xlu1 %567 }
 0xf22   :  { %v570_v13 = vadd.f32 %v568_v12, %v560_v11 }
 0xf24   :  { %867 = vtanh.f32 %v570_v13  ;;  %v633_v38 = vrot.slane %v570_v13, 6 }
 0xf2a   :  { %v868_v14 = vpop.eup %867 }
 0xf2b   :  { %573 = vrot.lane.b32.xlu2 %v868_v14, %s984_s21 }
 0xf85   :  { %v574_v15 = vpop.permute.xlu2 %573 }
 0xf86   :  { %v576_v16 = vmul.f32 %v574_v15, %v554_v7 }
 0xf88   :  { %v583_v17 = vrot.slane %v576_v16, 4 }
 0xf8a   :  { %584 = vrot.lane.b32.xlu0 %v583_v17, %s985_s3 }
 0xffc   :  { %v585_v18 = vpop.permute.xlu0 %584 }
 0xffd   :  { %798 = vmatmul.msk.f32.vlgmr.msra.gmra.mxu1 %vm71_vm6, %v585_v18 }
0x107a   :  { %v605_v19 = vpop.f32.mrf.mxu1 }
0x107b   :  { %v609_v20 = vrot.slane %v605_v19, 2 }
0x107d   :  { %v611_v21 = vadd.f32 %v609_v20, %v1108_v58 }
0x107f   :  { %869 = vtanh.f32 %v611_v21  ;;  %v799_v23 = vmul.f32 -1.442695, %v611_v21 }
0x1081   :  { %871 = vpow2.f32 %v799_v23 }
0x1085   :  { %v870_v22 = vpop.eup %869 }
0x1086   :  { %637 = vrot.lane.b32.xlu1 %v870_v22, %s984_s21 }
0x1087   :  { %v872_v24 = vpop.eup %871 }
0x1088   :  { %v615_v25 = vadd.f32 1.0, %v872_v24 }
0x108a   :  { %873 = vrcp.f32 %v615_v25  ;;  %v627_v32 = vand.u32 2147483648, %v615_v25  ;;  %vm621_vm2 = vweird.f32 %v615_v25  ;;  %v625_v33 = vand.u32 2147483647, %v615_v25 }
0x108c   :  { %v628_v34 = vor.u32 1.1754944e-38, %v627_v32  ;;  %vm626_vm0 = vcmp.eq.f32.partialorder %v625_v33, 8.507059e+37 }
0x1090   :  { %v874_v27 = vpop.eup %873 }
0x1091   :  { %v617_v28 = vmul.f32 %v874_v27, %v615_v25  ;;  %vm622_vm1 = vweird.f32 %v874_v27 }
0x1092   :  { %vm623_vm3 = vmor %vm621_vm2, %vm622_vm1 }
0x1093   :  { %v618_v29 = vsub.f32 1.0, %v617_v28 }
0x1095   :  { %v619_v30 = vmul.f32 %v874_v27, %v618_v29 }
0x1097   :  { %v620_v31 = vadd.f32 %v874_v27, %v619_v30 }
0x1099   :  { %v624_v58 = vsel %vm623_vm3, %v874_v27, %v620_v31 }
0x109a   :  { %v629_v36 = vsel %vm626_vm0, %v628_v34, %v624_v58 }
0x109b   :  { %v635_v39 = vmul.f32 %v633_v38, %v629_v36 }
0x10f8   :  { %v638_v35 = vpop.permute.xlu1 %637 }
0x10f9   :  { %v640_v37 = vmul.f32 %v638_v35, %v629_v36 }
0x10fb   :  { %642 = vrot.lane.b32.xlu2 %v640_v37, %s985_s3 }
0x1103   :  { %206 = vrot.lane.b32.xlu2 %v1080_v60, %s985_s3 }
0x110b   :  { %503 = vrot.lane.b32.xlu2 %v1121_v48, %s985_s3 }
0x1155   :  { %v643_v40 = vpop.permute.xlu2 %642 }
0x1156   :  { %v645_v41 = vadd.f32 %v643_v40, %v635_v39 }
0x1158   :  { %875 = vtanh.f32 %v645_v41  ;;  %660 = vrot.lane.b32.xlu2 %v645_v41, %s986_s0 }
0x115d   :  { %v207_v42 = vpop.permute.xlu2 %206 }
0x115e   :  { %v876_v9 = vpop.eup %875  ;;  %211 = vst.msk [vmem:[#allocation4] sm:$0xc] %vm210_vm4, %v207_v42 }
0x115f   :  { %648 = vrot.lane.b32.xlu0 %v876_v9, %s984_s21  ;;  %s990_s21 = smov [#allocation7]  }
0x1160   :  { %s758_s22 = sshll.u32 %s990_s21, 4  ;;  %s759_s22 = int_to_ptr.vmem [resolvable:$true] %s758_s22 }
0x1165   :  { %v504_v43 = vpop.permute.xlu2 %503 }
0x1166   :  { %507 = vst.msk [vmem:[#allocation4 + $0x8] sm:$0xc] %vm210_vm4, %v504_v43 }
0x1167   :  { %282 = vrot.lane.b32.xlu0 %v1089_v26, %s985_s3  ;;  %v664_v26 = vld [vmem:[%s1185_s4] sm:$0xff] }
0x1168   :  { %692 = vmatpush.msra.mxu2 %v664_v26 }
0x116f   :  { %578 = vrot.lane.b32.xlu0 %v576_v16, %s985_s3 }
0x11b2   :  { %v661_v60 = vpop.permute.xlu2 %660 }
0x11b3   :  { %663 = vst.msk [vmem:[#allocation7 - $0x6] sm:$0xc0] %vm362_vm7, %v661_v60 }
0x11b4   :  { %763 = dma.vmem_to_hbm [thread:$0]  %s759_s22, 32, %s761_s7, [#allocation8]  }
0x11d1   :  { %v649_v47 = vpop.permute.xlu0 %648 }
0x11d2   :  { %v651_v48 = vmul.f32 %v649_v47, %v629_v36 }
0x11d4   :  { %v672_v49 = vrot.slane %v651_v48, 6 }
0x11d6   :  { %673 = vrot.lane.b32.xlu1 %v672_v49, %s985_s3 }
0x11d9   :  { %v283_v50 = vpop.permute.xlu0 %282 }
0x11da   :  { %287 = vst.msk [vmem:[#allocation4] sm:$0x30] %vm286_vm8, %v283_v50 }
0x11de   :  { %358 = vrot.lane.b32.xlu1 %v1098_v53, %s985_s3  ;;  %v812_v53 = vld [vmem:[%s1186_s5] ss:$0 sm:$0xff]  ;;  %s725_s5 = sshll.u32 %s1187_s6, 4  ;;  %s726_s5 = int_to_ptr.hbm [resolvable:$true] %s725_s5 }
0x11e1   :  { %v579_v51 = vpop.permute.xlu0 %578 }
0x11e2   :  { %582 = vst.msk [vmem:[#allocation4 + $0x8] sm:$0x30] %vm286_vm8, %v579_v51 }
0x11e6   :  { %653 = vrot.lane.b32.xlu1 %v651_v48, %s985_s3 }
0x1248   :  { %v674_v52 = vpop.permute.xlu1 %673 }
0x1249   :  { %800 = vmatmul.msk.f32.vlgmr.msra.gmra.mxu2 %vm71_vm6, %v674_v52 }
0x1250   :  { %v359_v54 = vpop.permute.xlu1 %358 }
0x1251   :  { %363 = vst.msk [vmem:[#allocation4] sm:$0xc0] %vm362_vm7, %v359_v54 }
0x1258   :  { %v654_v55 = vpop.permute.xlu1 %653 }
0x1259   :  { %657 = vst.msk [vmem:[#allocation4 + $0x8] sm:$0xc0] %vm362_vm7, %v654_v55 }
0x125a   :  { %658 = vst.msk [vmem:[#allocation6 - $0x6] sm:$0xc0] %vm362_vm7, %v654_v55  ;;  %741 = dma.vmem_to_hbm [thread:$0]  %s734_s14, 256, %s736_s12, [#allocation5], %s985_s3, %s985_s3, %s988_s15  }
0x125b   :  { %752 = dma.vmem_to_hbm [thread:$0]  %s748_s17, 32, %s750_s20, [#allocation5]  }
0x12cc   :  { %v694_v56 = vpop.f32.mrf.mxu2 }
0x12cd   :  { %v695_v57 = vadd.f32 %v812_v53, %v694_v56 }
0x12cf   :  { %v801_v59 = vmul.f32 -1.442695, %v695_v57 }
0x12d1   :  { %877 = vpow2.f32 %v801_v59 }
0x12d7   :  { %v878_v61 = vpop.eup %877 }
0x12d8   :  { %v700_v62 = vadd.f32 1.0, %v878_v61 }
0x12da   :  { %879 = vrcp.f32 %v700_v62  ;;  %v712_v2 = vand.u32 2147483648, %v700_v62  ;;  %v710_v4 = vand.u32 2147483647, %v700_v62  ;;  %vm706_vm5 = vweird.f32 %v700_v62 }
0x12dc   :  { %v713_v6 = vor.u32 1.1754944e-38, %v712_v2  ;;  %vm711_vm11 = vcmp.eq.f32.partialorder %v710_v4, 8.507059e+37 }
0x12e0   :  { %v880_v63 = vpop.eup %879 }
0x12e1   :  { %v702_v0 = vmul.f32 %v880_v63, %v700_v62  ;;  %vm707_vm6 = vweird.f32 %v880_v63 }
0x12e2   :  { %vm708_vm9 = vmor %vm706_vm5, %vm707_vm6 }
0x12e3   :  { %v703_v1 = vsub.f32 1.0, %v702_v0 }
0x12e5   :  { %v704_v3 = vmul.f32 %v880_v63, %v703_v1 }
0x12e7   :  { %v705_v5 = vadd.f32 %v880_v63, %v704_v3 }
0x12e9   :  { %v709_v7 = vsel %vm708_vm9, %v880_v63, %v705_v5 }
0x12ea   :  { %v714_v8 = vsel %vm711_vm11, %v713_v6, %v709_v7 }
0x12eb   :  { %717 = vst.msk [vmem:[#allocation2] sm:$0x3] %vm716_vm10, %v714_v8 }
0x12ec   :  { %728 = dma.vmem_to_hbm [thread:$0]  %s724_s9, 32, %s726_s5, [#allocation3]  }
0x12ed   :  { %977 = dma.done.wait [#allocation3], 32  }
0x12ee   :  { %978 = vsyncadd [#allocation3], 4294967264 }
0x12ef   :  { %979 = dma.done.wait [#allocation5], 288  }
0x12f0   :  { %980 = vsyncadd [#allocation5], 4294967008 }
0x12f1   :  { %981 = dma.done.wait [#allocation8], 32  }
0x12f2   :  { %982 = vsyncadd [#allocation8], 4294967264 }
0x12f3   :  { %780 = vsyncpa [#allocation3], 1 }
0x12f4   :  { %781 = vsyncpa [#allocation5], 1 }
0x12f5   :  { %782 = vsyncpa [#allocation8], 1 }

</bundles_post_ra>
